<compile_context>
chip_gen: v7x
topology: tpu7x:2x2x1
jax: 0.10.0
libtpu: 0.0.40
codegen_flags: <defaults>
</compile_context>

<pallas_src>
import functools

import jax
import jax.numpy as jnp
from jax.experimental import pallas as pl
from jax.experimental.pallas import tpu as pltpu


# ----------------------------------------------------------------------------
# Small helpers.
# ----------------------------------------------------------------------------
def _ceil_to(a, b):
    return -(-a // b) * b


def _cswap(a, b):
    """Element-wise compare-exchange: returns (min, max)."""
    return jnp.minimum(a, b), jnp.maximum(a, b)


def _med3(a, b, c):
    """Element-wise median of three (4 min/max ops)."""
    lo = jnp.minimum(a, b)
    hi = jnp.maximum(a, b)
    return jnp.maximum(lo, jnp.minimum(hi, c))


def _window_median_generic(vals):
    """Lower-middle order statistic (torch.median convention) of a list of
    element-wise arrays via a partial selection network (pure VPU min/max)."""
    n = len(vals)
    v = list(vals)
    k = (n - 1) // 2
    # After pass i, v[i] holds the i-th smallest value at every position.
    for i in range(k + 1):
        for j in range(i + 1, n):
            v[i], v[j] = _cswap(v[i], v[j])
    return v[k]


# ----------------------------------------------------------------------------
# Kernel.
# ----------------------------------------------------------------------------
def _median_pool_kernel(x_ref, o_ref, *, kh, kw, w_axis):
    """x_ref block: (Hp, Wp, L) if w_axis == 1 (N*C on lanes)
                    (Hp, L, Wp) if w_axis == 2 (W on lanes).
       o_ref block: same layout with (oh1, ow1) spatial extents (stride 1)."""
    x = x_ref[...]                       # native dtype; min/max net is exact
    hp = x.shape[0]
    wp = x.shape[w_axis]
    oh1 = hp - kh + 1                    # stride-1 output extents
    ow1 = wp - kw + 1

    def shift_w(arr, dx):                # kw-1 offset slices along a minor axis
        if w_axis == 1:
            return arr[:, dx:dx + ow1, :]
        return arr[:, :, dx:dx + ow1]

    def shift_h(arr, dy):                # free leading-dim slices
        return arr[dy:dy + oh1]

    if kh == 3 and kw == 3:
        # Separable median-of-9: sort the 3 horizontal shifts elementwise,
        # then combine the 3 vertical shifts of (lo, md, hi).  18 VALU ops.
        c0 = shift_w(x, 0)
        c1 = shift_w(x, 1)
        c2 = shift_w(x, 2)
        lo, t = _cswap(c0, c1)
        t, hi = _cswap(t, c2)
        lo, md = _cswap(lo, t)           # now lo <= md <= hi per row-triple
        mx_lo = jnp.maximum(jnp.maximum(shift_h(lo, 0), shift_h(lo, 1)),
                            shift_h(lo, 2))
        mn_hi = jnp.minimum(jnp.minimum(shift_h(hi, 0), shift_h(hi, 1)),
                            shift_h(hi, 2))
        md_md = _med3(shift_h(md, 0), shift_h(md, 1), shift_h(md, 2))
        med = _med3(mx_lo, md_md, mn_hi)
    else:
        cols = [shift_w(x, dx) for dx in range(kw)]
        vals = [shift_h(c, dy) for dy in range(kh) for c in cols]
        med = _window_median_generic(vals)

    o_ref[...] = med.astype(o_ref.dtype)


# ----------------------------------------------------------------------------
# Wrapper: layout choice, VMEM-aware tiling, pallas_call.
# ----------------------------------------------------------------------------
def _compute_padding(ih, iw, kh, kw, sh, sw, padding, same):
    """Mirrors MedianPool2d._padding."""
    if same:
        ph = max(kh - sh, 0) if ih % sh == 0 else max(kh - ih % sh, 0)
        pw = max(kw - sw, 0) if iw % sw == 0 else max(kw - iw % sw, 0)
        p_l = pw // 2
        p_r = pw - p_l
        p_t = ph // 2
        p_b = ph - p_t
        return p_l, p_r, p_t, p_b
    if isinstance(padding, int):
        padding = (padding,) * 4
    return tuple(padding)


def _tile_bytes(leading, sub, lane, itemsize):
    """Bytes of a (leading, sub, lane) VMEM array with (8,128) tile padding and
    sublane packing for sub-32-bit dtypes."""
    sub_round = 8 * max(1, 4 // itemsize)
    return (leading * _ceil_to(max(sub, 1), sub_round)
            * _ceil_to(max(lane, 1), 128) * itemsize)


def _pad_ratio(sub, lane, itemsize):
    """Padded-to-useful element ratio of a (sub, lane) minor-dim pair."""
    sub_round = 8 * max(1, 4 // itemsize)
    return (_ceil_to(max(sub, 1), sub_round) * _ceil_to(max(lane, 1), 128)
            ) / float(max(sub * lane, 1))


def _vmem_policy():
    """Per-generation (budget_bytes, vmem_limit_bytes_or_None, prefer_2_steps)."""
    kind = ""
    try:
        kind = jax.devices()[0].device_kind.lower()
    except Exception:
        pass
    if "v7" in kind:
        # 64 MiB physical VMEM, 2 TensorCores -> modest blocks, >= 2 grid steps.
        return 14 << 20, 40 << 20, True
    if ("v5" in kind) or ("v6" in kind):
        # 128 MiB physical VMEM -> bigger blocks, fewer grid-step overheads.
        return 28 << 20, 96 << 20, False
    return 12 << 20, None, False


def _pick_nc_block(nc, unit, live_bytes, budget, prefer_multi_step):
    """Largest N*C block (multiple of `unit`, or the full extent) under budget."""
    if nc <= unit:
        return nc
    if live_bytes(nc) <= budget:
        if prefer_multi_step and nc >= 2 * unit:
            # Keep >= 2 grid steps so both v7x TensorCores get work.
            return max(unit, (nc // 2) // unit * unit)
        return nc
    for m in range(nc // unit, 0, -1):
        if live_bytes(m * unit) <= budget:
            return m * unit
    # TODO(synk): even the minimal block exceeds the budget (huge Hp*Wp with
    # tiny N*C): needs H-halo tiling; fall back to the minimal block.
    return unit


def median_pool_2d(x, kernel_size=(3, 3), stride=(1, 1), padding=(0, 0, 0, 0),
                   same=False):
    """JAX/Pallas equivalent of MedianPool2d.forward.  x: (N, C, H, W)."""
    kh, kw = kernel_size
    sh, sw = stride
    n, c, ih, iw = x.shape

    p_l, p_r, p_t, p_b = _compute_padding(ih, iw, kh, kw, sh, sw, padding, same)

    # Reflect pad (F.pad order is (l, r, t, b) over the (W, H) dims).
    if p_l or p_r or p_t or p_b:
        x = jnp.pad(x, ((0, 0), (0, 0), (p_t, p_b), (p_l, p_r)), mode="reflect")

    hp, wp = x.shape[2], x.shape[3]
    oh = (hp - kh) // sh + 1
    ow = (wp - kw) // sw + 1
    oh1 = hp - kh + 1                    # stride-1 extents produced by the kernel
    ow1 = wp - kw + 1

    nc = n * c
    itemsize = jnp.dtype(x.dtype).itemsize
    budget, vmem_limit, prefer_multi_step = _vmem_policy()

    # Layout choice: put whichever of (N*C, W) wastes fewer lane/sublane slots
    # on the 128-lane axis (ties prefer N*C-on-lanes, the common big-batch case).
    channels_last = (_pad_ratio(wp, nc, itemsize) <= _pad_ratio(nc, wp, itemsize))

    is_3x3 = (kh == 3 and kw == 3)
    n_shift = 3 if is_3x3 else kw        # input-height shifted copies live at once
    n_tmp = 8 if is_3x3 else (kh * kw + 4)   # output-sized network temporaries

    if channels_last:
        unit = 128                                   # lane-axis block granularity

        def live_bytes(ncb):
            return (2 * _tile_bytes(hp, wp, ncb, itemsize)
                    + n_shift * _tile_bytes(hp, ow1, ncb, itemsize)
                    + n_tmp * _tile_bytes(oh1, ow1, ncb, itemsize))
    else:
        unit = 8 * max(1, 4 // itemsize)             # sublane-axis granularity

        def live_bytes(ncb):
            return (2 * _tile_bytes(hp, ncb, wp, itemsize)
                    + n_shift * _tile_bytes(hp, ncb, ow1, itemsize)
                    + n_tmp * _tile_bytes(oh1, ncb, ow1, itemsize))

    ncb = _pick_nc_block(nc, unit, live_bytes, budget, prefer_multi_step)
    ncp = _ceil_to(nc, ncb)
    grid = (ncp // ncb,)

    xf = x.reshape(nc, hp, wp)
    if channels_last:
        xf = jnp.transpose(xf, (1, 2, 0))            # (Hp, Wp, NC): NC on lanes
        if ncp != nc:
            xf = jnp.pad(xf, ((0, 0), (0, 0), (0, ncp - nc)))
        in_spec = pl.BlockSpec((hp, wp, ncb), lambda i: (0, 0, i))
        out_spec = pl.BlockSpec((oh1, ow1, ncb), lambda i: (0, 0, i))
        out_shape = jax.ShapeDtypeStruct((oh1, ow1, ncp), x.dtype)
        w_axis = 1
    else:
        xf = jnp.transpose(xf, (1, 0, 2))            # (Hp, NC, Wp): W on lanes
        if ncp != nc:
            xf = jnp.pad(xf, ((0, 0), (0, ncp - nc), (0, 0)))
        in_spec = pl.BlockSpec((hp, ncb, wp), lambda i: (0, i, 0))
        out_spec = pl.BlockSpec((oh1, ncb, ow1), lambda i: (0, i, 0))
        out_shape = jax.ShapeDtypeStruct((oh1, ncp, ow1), x.dtype)
        w_axis = 2

    cp_kwargs = dict(dimension_semantics=("parallel",))
    if vmem_limit is not None:
        cp_kwargs["vmem_limit_bytes"] = int(vmem_limit)

    kernel = functools.partial(_median_pool_kernel, kh=kh, kw=kw, w_axis=w_axis)

    out3 = pl.pallas_call(
        kernel,
        out_shape=out_shape,
        grid_spec=pltpu.PrefetchScalarGridSpec(
            num_scalar_prefetch=0,
            grid=grid,
            in_specs=[in_spec],
            out_specs=out_spec,
        ),
        compiler_params=pltpu.CompilerParams(**cp_kwargs),
    )(xf)

    # Stride decimation + un-transpose (layout plumbing, pure XLA).
    if channels_last:
        out3 = out3[::sh, ::sw, :nc]
        out = jnp.transpose(out3, (2, 0, 1))
    else:
        out3 = out3[::sh, :nc, ::sw]
        out = jnp.transpose(out3, (1, 0, 2))
    return out.reshape(n, c, oh, ow)


# ----------------------------------------------------------------------------
# Pure-JAX reference (torch lower-middle median semantics).
# ----------------------------------------------------------------------------
def _reference_median_pool(x, kernel_size=(3, 3), stride=(1, 1),
                           padding=(0, 0, 0, 0), same=False):
    kh, kw = kernel_size
    sh, sw = stride
    n, c, ih, iw = x.shape
    p_l, p_r, p_t, p_b = _compute_padding(ih, iw, kh, kw, sh, sw, padding, same)
    if p_l or p_r or p_t or p_b:
        x = jnp.pad(x, ((0, 0), (0, 0), (p_t, p_b), (p_l, p_r)), mode="reflect")
    hp, wp = x.shape[2], x.shape[3]
    oh = (hp - kh) // sh + 1
    ow = (wp - kw) // sw + 1
    patches = []
    for dy in range(kh):
        for dx in range(kw):
            patches.append(
                x[:, :, dy:dy + (oh - 1) * sh + 1:sh, dx:dx + (ow - 1) * sw + 1:sw])
    stacked = jnp.stack(patches, axis=-1)            # (N, C, oh, ow, kh*kw)
    k = (kh * kw - 1) // 2
    return jnp.sort(stacked, axis=-1)[..., k]


if __name__ == "__main__":
    key = jax.random.PRNGKey(0)
    k1, k2, k3 = jax.random.split(key, 3)

    # 1) Default config (3x3, stride 1, padding 0): few planes -> W-on-lanes.
    x = jax.random.normal(k1, (2, 4, 16, 16), dtype=jnp.float32)
    out = jax.block_until_ready(median_pool_2d(x))
    ref = _reference_median_pool(x)
    assert out.shape == (2, 4, 14, 14), out.shape
    assert jnp.array_equal(out, ref), "mismatch (default 3x3)"

    # 2) same=True -> reflect padding, spatial size preserved.
    out_same = jax.block_until_ready(median_pool_2d(x, same=True))
    ref_same = _reference_median_pool(x, same=True)
    assert out_same.shape == (2, 4, 16, 16), out_same.shape
    assert jnp.array_equal(out_same, ref_same), "mismatch (same=True)"

    # 3) stride 2 (decimation handled in the wrapper).
    out_s2 = jax.block_until_ready(median_pool_2d(x, stride=(2, 2), same=True))
    ref_s2 = _reference_median_pool(x, stride=(2, 2), same=True)
    assert out_s2.shape == (2, 4, 8, 8), out_s2.shape
    assert jnp.array_equal(out_s2, ref_s2), "mismatch (stride=2)"

    # 4) Many planes -> channels-last (N*C on lanes) layout.
    xw = jax.random.normal(k2, (2, 64, 12, 16), dtype=jnp.float32)
    out_cl = jax.block_until_ready(median_pool_2d(xw))
    ref_cl = _reference_median_pool(xw)
    assert out_cl.shape == (2, 64, 10, 14), out_cl.shape
    assert jnp.array_equal(out_cl, ref_cl), "mismatch (channels-last layout)"

    # 5) 5x5 window -> generic order-statistic network path.
    x5 = jax.random.normal(k3, (1, 2, 12, 12), dtype=jnp.float32)
    out5 = jax.block_until_ready(median_pool_2d(x5, kernel_size=(5, 5)))
    ref5 = _reference_median_pool(x5, kernel_size=(5, 5))
    assert out5.shape == (1, 2, 8, 8), out5.shape
    assert jnp.array_equal(out5, ref5), "mismatch (5x5 generic network)"

    # 6) Integer inputs stay exact (native-dtype min/max network).
    xi = jax.random.randint(k1, (2, 4, 16, 16), minval=-(2 ** 28),
                            maxval=2 ** 28, dtype=jnp.int32)
    out_i = jax.block_until_ready(median_pool_2d(xi))
    ref_i = _reference_median_pool(xi)
    assert jnp.array_equal(out_i, ref_i), "mismatch (int32)"

    print("KERNEL_OK")
</pallas_src>

<mosaic_0001>
module attributes {stable_mosaic.version = 11 : i64} {
  func.func @_median_pool_kernel(%arg0: i32, %arg1: memref<16x8x16xf32, #tpu.memory_space<vmem>>, %arg2: memref<14x8x14xf32, #tpu.memory_space<vmem>>) attributes {dimension_semantics = [#tpu.dimension_semantics<parallel>], iteration_bounds = array<i64: 1>, scalar_prefetch = 0 : i64, scratch_operands = 0 : i64, tpu.core_type = #tpu.core_type<tc>, window_params = [{transform_indices = @transform_0, window_bounds = array<i64: 16, 8, 16>}, {transform_indices = @transform_1, window_bounds = array<i64: 14, 8, 14>}]} {
    %c0 = arith.constant 0 : index
    %c0_0 = arith.constant 0 : index
    %c0_1 = arith.constant 0 : index
    %0 = vector.load %arg1[%c0, %c0_0, %c0_1] : memref<16x8x16xf32, #tpu.memory_space<vmem>>, vector<16x8x16xf32>
    %1 = vector.extract_strided_slice %0 {offsets = [0, 0, 0], sizes = [16, 8, 14], strides = [1, 1, 1]} : vector<16x8x16xf32> to vector<16x8x14xf32>
    %2 = vector.extract_strided_slice %0 {offsets = [0, 0, 1], sizes = [16, 8, 14], strides = [1, 1, 1]} : vector<16x8x16xf32> to vector<16x8x14xf32>
    %3 = vector.extract_strided_slice %0 {offsets = [0, 0, 2], sizes = [16, 8, 14], strides = [1, 1, 1]} : vector<16x8x16xf32> to vector<16x8x14xf32>
    %4 = arith.minimumf %1, %2 : vector<16x8x14xf32>
    %5 = arith.maximumf %1, %2 : vector<16x8x14xf32>
    %6 = arith.minimumf %5, %3 : vector<16x8x14xf32>
    %7 = arith.maximumf %5, %3 : vector<16x8x14xf32>
    %8 = arith.minimumf %4, %6 : vector<16x8x14xf32>
    %9 = arith.maximumf %4, %6 : vector<16x8x14xf32>
    %10 = vector.extract_strided_slice %8 {offsets = [0, 0, 0], sizes = [14, 8, 14], strides = [1, 1, 1]} : vector<16x8x14xf32> to vector<14x8x14xf32>
    %11 = vector.extract_strided_slice %8 {offsets = [1, 0, 0], sizes = [14, 8, 14], strides = [1, 1, 1]} : vector<16x8x14xf32> to vector<14x8x14xf32>
    %12 = arith.maximumf %10, %11 : vector<14x8x14xf32>
    %13 = vector.extract_strided_slice %8 {offsets = [2, 0, 0], sizes = [14, 8, 14], strides = [1, 1, 1]} : vector<16x8x14xf32> to vector<14x8x14xf32>
    %14 = arith.maximumf %12, %13 : vector<14x8x14xf32>
    %15 = vector.extract_strided_slice %7 {offsets = [0, 0, 0], sizes = [14, 8, 14], strides = [1, 1, 1]} : vector<16x8x14xf32> to vector<14x8x14xf32>
    %16 = vector.extract_strided_slice %7 {offsets = [1, 0, 0], sizes = [14, 8, 14], strides = [1, 1, 1]} : vector<16x8x14xf32> to vector<14x8x14xf32>
    %17 = arith.minimumf %15, %16 : vector<14x8x14xf32>
    %18 = vector.extract_strided_slice %7 {offsets = [2, 0, 0], sizes = [14, 8, 14], strides = [1, 1, 1]} : vector<16x8x14xf32> to vector<14x8x14xf32>
    %19 = arith.minimumf %17, %18 : vector<14x8x14xf32>
    %20 = vector.extract_strided_slice %9 {offsets = [0, 0, 0], sizes = [14, 8, 14], strides = [1, 1, 1]} : vector<16x8x14xf32> to vector<14x8x14xf32>
    %21 = vector.extract_strided_slice %9 {offsets = [1, 0, 0], sizes = [14, 8, 14], strides = [1, 1, 1]} : vector<16x8x14xf32> to vector<14x8x14xf32>
    %22 = vector.extract_strided_slice %9 {offsets = [2, 0, 0], sizes = [14, 8, 14], strides = [1, 1, 1]} : vector<16x8x14xf32> to vector<14x8x14xf32>
    %23 = arith.minimumf %20, %21 : vector<14x8x14xf32>
    %24 = arith.maximumf %20, %21 : vector<14x8x14xf32>
    %25 = arith.minimumf %24, %22 : vector<14x8x14xf32>
    %26 = arith.maximumf %23, %25 : vector<14x8x14xf32>
    %27 = arith.minimumf %14, %26 : vector<14x8x14xf32>
    %28 = arith.maximumf %14, %26 : vector<14x8x14xf32>
    %29 = arith.minimumf %28, %19 : vector<14x8x14xf32>
    %30 = arith.maximumf %27, %29 : vector<14x8x14xf32>
    %c0_2 = arith.constant 0 : index
    %c0_3 = arith.constant 0 : index
    %c0_4 = arith.constant 0 : index
    %31 = vector.load %arg2[%c0_2, %c0_3, %c0_4] : memref<14x8x14xf32, #tpu.memory_space<vmem>>, vector<14x8x14xf32>
    tpu.vector_store %arg2[%c0_2, %c0_3, %c0_4], %30 {strides = array<i32>} : memref<14x8x14xf32, #tpu.memory_space<vmem>>, vector<14x8x14xf32>,
    return
  }
  func.func @transform_0(%arg0: i32) -> (i32, i32, i32) {
    %c0_i32 = arith.constant 0 : i32
    %c0_i32_0 = arith.constant 0 : i32
    %c0_i32_1 = arith.constant 0 : i32
    return %c0_i32, %arg0, %c0_i32_0 : i32, i32, i32
  }
  func.func @transform_1(%arg0: i32) -> (i32, i32, i32) {
    %c0_i32 = arith.constant 0 : i32
    %c0_i32_0 = arith.constant 0 : i32
    %c0_i32_1 = arith.constant 0 : i32
    return %c0_i32, %arg0, %c0_i32_0 : i32, i32, i32
  }
}

</mosaic_0001>

<bundles_post_ra>
// kernel: tpu_custom_call.1
= control target key start
LH: loop header
LB: loop body
LE: loop exit
PB: predicated region body
PF: predicated region fallthrough
CT: control target
= control target key end

     0   :  { %6 = vsyncpa [#allocation3], 0  ;;  %s857_s0 = inlined_call_operand.hbm [shape: f32[16,8,16], index: 0, kind: input, shape index: {}]   ;;  %s858_s1 = inlined_call_operand.hbm [shape: f32[14,8,14], index: 1, kind: output, shape index: {}]  }
   0x1   :  { %7 = vsyncpa [#allocation4], 0  ;;  %s501_s6 = smov [#allocation2]   ;;  %s453_s10 = scalar_lea.hbm %s857_s0, 2048 }
   0x2   :  { %s13_s7 = sshll.u32 %s501_s6, 4  ;;  %p454_p0 = scmp.ne.s32.totalorder %s857_s0, %s453_s10  ;;  %s14_s7 = int_to_ptr.vmem [resolvable:$true] %s13_s7 }
   0x3   :  { %p457_p1 = scmp.lt.u32.totalorder %s453_s10, %s857_s0 }
   0x5   :  { %p459_p2 = pnand %p457_p1, %p454_p0 }
   0x7   :  { %462 = shalt.err (!%p459_p2)
}
   0x8   :  { %s463_s15 = scalar_lea.vmem %s14_s7, 2048  ;;  %p468_p4 = scmp.lt.s32.totalorder %s14_s7, %s14_s7 }
   0x9   :  { %p464_p3 = scmp.ne.s32.totalorder %s14_s7, %s463_s15  ;;  %p469_p5 = scmp.lt.s32.totalorder %s463_s15, %s463_s15 }
   0xb   :  { %p470_p6 = por %p469_p5, %p468_p4 }
   0xd   :  { %p471_p7 = pnand %p470_p6, %p464_p3 }
   0xf   :  { %474 = shalt.err (!%p471_p7)
}
  0x10   :  { %s502_s16 = smov 128   ;;  %s503_s17 = smov 8  }
  0x11   :  { %19 = dma.hbm_to_vmem [thread:$0]  %s857_s0, 2048, %s14_s7, [#allocation3], %s502_s16, %s502_s16, %s503_s17  }
  0x12   :  { %497 = dma.done.wait [#allocation3], 2048  }
  0x13   :  { %498 = vsyncadd [#allocation3], 4294965248  ;;  %v532_v0 = vld [vmem:[#allocation2 + $0x10] sm:$0xff]  ;;  %v534_v1 = vld [vmem:[#allocation2] sm:$0xff]  ;;  %s504_s20 = smov 127   ;;  %s505_s0 = smov 126  }
  0x14   :  { %59 = vrot.lane.b32.xlu1 %v532_v0, %s504_s20  ;;  %55 = vrot.lane.b32.xlu0 %v534_v1, %s504_s20  ;;  %v538_v2 = vld [vmem:[#allocation2 + $0x18] sm:$0xff]  ;;  %v540_v3 = vld [vmem:[#allocation2 + $0x8] sm:$0xff]  ;;  %v546_v5 = vld [vmem:[#allocation2 + $0x20] sm:$0xff]  ;;  %vm415_vm0 = vcmask 113664   ;;  %s506_s21 = smov [#allocation5]  }
  0x15   :  { %v544_v4 = vld [vmem:[#allocation2 + $0x28] sm:$0xff]  ;;  %v550_v6 = vld [vmem:[#allocation2 + $0x38] sm:$0xff]  ;;  %v552_v7 = vld [vmem:[#allocation2 + $0x30] sm:$0xff]  ;;  %s435_s22 = sshll.u32 %s506_s21, 4  ;;  %s436_s22 = int_to_ptr.vmem [resolvable:$true] %s435_s22 }
  0x16   :  { %v556_v8 = vld [vmem:[#allocation2 + $0x48] sm:$0xff]  ;;  %v558_v9 = vld [vmem:[#allocation2 + $0x40] sm:$0xff]  ;;  %v562_v10 = vld [vmem:[#allocation2 + $0x58] sm:$0xff]  ;;  %s475_s23 = scalar_lea.vmem %s436_s22, 1792  ;;  %p480_p9 = scmp.lt.s32.totalorder %s436_s22, %s436_s22 }
  0x17   :  { %v564_v11 = vld [vmem:[#allocation2 + $0x50] sm:$0xff]  ;;  %v568_v12 = vld [vmem:[#allocation2 + $0x68] sm:$0xff]  ;;  %v570_v13 = vld [vmem:[#allocation2 + $0x60] sm:$0xff]  ;;  %p476_p8 = scmp.ne.s32.totalorder %s436_s22, %s475_s23  ;;  %p481_p10 = scmp.lt.s32.totalorder %s475_s23, %s475_s23 }
  0x18   :  { %61 = vrot.lane.b32.xlu1 %v538_v2, %s504_s20  ;;  %57 = vrot.lane.b32.xlu0 %v540_v3, %s504_s20  ;;  %v574_v14 = vld [vmem:[#allocation2 + $0x78] sm:$0xff]  ;;  %v576_v15 = vld [vmem:[#allocation2 + $0x70] sm:$0xff] }
  0x19   :  { %p482_p11 = por %p481_p10, %p480_p9 }
  0x1b   :  { %p483_p12 = pnand %p482_p11, %p476_p8 }
  0x1c   :  { %65 = vrot.lane.b32.xlu1 %v544_v4, %s504_s20  ;;  %63 = vrot.lane.b32.xlu0 %v546_v5, %s504_s20 }
  0x20   :  { %69 = vrot.lane.b32.xlu1 %v550_v6, %s504_s20  ;;  %67 = vrot.lane.b32.xlu0 %v552_v7, %s504_s20 }
  0x24   :  { %73 = vrot.lane.b32.xlu1 %v556_v8, %s504_s20  ;;  %71 = vrot.lane.b32.xlu0 %v558_v9, %s504_s20 }
  0x28   :  { %77 = vrot.lane.b32.xlu1 %v562_v10, %s504_s20  ;;  %75 = vrot.lane.b32.xlu0 %v564_v11, %s504_s20 }
  0x2c   :  { %81 = vrot.lane.b32.xlu1 %v568_v12, %s504_s20  ;;  %79 = vrot.lane.b32.xlu0 %v570_v13, %s504_s20 }
  0x30   :  { %85 = vrot.lane.b32.xlu1 %v574_v14, %s504_s20  ;;  %83 = vrot.lane.b32.xlu0 %v576_v15, %s504_s20 }
  0x34   :  { %137 = vrot.lane.b32.xlu1 %v540_v3, %s505_s0  ;;  %135 = vrot.lane.b32.xlu0 %v534_v1, %s505_s0 }
  0x38   :  { %141 = vrot.lane.b32.xlu1 %v538_v2, %s505_s0  ;;  %139 = vrot.lane.b32.xlu0 %v532_v0, %s505_s0 }
  0x3c   :  { %145 = vrot.lane.b32.xlu1 %v544_v4, %s505_s0  ;;  %143 = vrot.lane.b32.xlu0 %v546_v5, %s505_s0 }
  0x40   :  { %149 = vrot.lane.b32.xlu1 %v550_v6, %s505_s0  ;;  %147 = vrot.lane.b32.xlu0 %v552_v7, %s505_s0 }
  0x44   :  { %153 = vrot.lane.b32.xlu1 %v556_v8, %s505_s0  ;;  %151 = vrot.lane.b32.xlu0 %v558_v9, %s505_s0 }
  0x48   :  { %157 = vrot.lane.b32.xlu1 %v562_v10, %s505_s0  ;;  %155 = vrot.lane.b32.xlu0 %v564_v11, %s505_s0 }
  0x4c   :  { %161 = vrot.lane.b32.xlu1 %v568_v12, %s505_s0  ;;  %159 = vrot.lane.b32.xlu0 %v570_v13, %s505_s0 }
  0x50   :  { %165 = vrot.lane.b32.xlu1 %v574_v14, %s505_s0  ;;  %163 = vrot.lane.b32.xlu0 %v576_v15, %s505_s0 }
  0x86   :  { %v60_v16 = vpop.permute.xlu1 %59  ;;  %v56_v17 = vpop.permute.xlu0 %55 }
  0x87   :  { %v105_v32 = vmin.f32 %v532_v0, %v60_v16  ;;  %v121_v33 = vmax.f32 %v532_v0, %v60_v16  ;;  %v103_v34 = vmin.f32 %v534_v1, %v56_v17  ;;  %v119_v35 = vmax.f32 %v534_v1, %v56_v17 }
  0x8a   :  { %v62_v18 = vpop.permute.xlu1 %61  ;;  %v58_v19 = vpop.permute.xlu0 %57 }
  0x8b   :  { %v106_v36 = vmin.f32 %v538_v2, %v62_v18  ;;  %v122_v37 = vmax.f32 %v538_v2, %v62_v18  ;;  %v120_v38 = vmax.f32 %v540_v3, %v58_v19  ;;  %v104_v39 = vmin.f32 %v540_v3, %v58_v19 }
  0x8e   :  { %v66_v20 = vpop.permute.xlu1 %65  ;;  %v64_v21 = vpop.permute.xlu0 %63 }
  0x8f   :  { %v609_v40 = vmin.f32 %v544_v4, %v66_v20  ;;  %v124_v41 = vmax.f32 %v544_v4, %v66_v20  ;;  %v613_v42 = vmin.f32 %v546_v5, %v64_v21  ;;  %v123_v45 = vmax.f32 %v546_v5, %v64_v21 }
  0x92   :  { %v70_v22 = vpop.permute.xlu1 %69  ;;  %v68_v23 = vpop.permute.xlu0 %67 }
  0x93   :  { %v617_v46 = vmin.f32 %v550_v6, %v70_v22  ;;  %v620_v49 = vmax.f32 %v550_v6, %v70_v22  ;;  %v623_v50 = vmin.f32 %v552_v7, %v68_v23  ;;  %v626_v51 = vmax.f32 %v552_v7, %v68_v23 }
  0x96   :  { %v74_v24 = vpop.permute.xlu1 %73  ;;  %v72_v25 = vpop.permute.xlu0 %71 }
  0x97   :  { %v629_v52 = vmin.f32 %v556_v8, %v74_v24  ;;  %v632_v53 = vmax.f32 %v556_v8, %v74_v24  ;;  %v635_v54 = vmin.f32 %v558_v9, %v72_v25  ;;  %v638_v55 = vmax.f32 %v558_v9, %v72_v25 }
  0x9a   :  { %v78_v26 = vpop.permute.xlu1 %77  ;;  %v76_v27 = vpop.permute.xlu0 %75 }
  0x9b   :  { %v641_v56 = vmin.f32 %v562_v10, %v78_v26  ;;  %v644_v57 = vmax.f32 %v562_v10, %v78_v26  ;;  %v647_v58 = vmin.f32 %v564_v11, %v76_v27  ;;  %v650_v3 = vmax.f32 %v564_v11, %v76_v27 }
  0x9e   :  { %v82_v28 = vpop.permute.xlu1 %81  ;;  %v80_v29 = vpop.permute.xlu0 %79 }
  0x9f   :  { %v653_v4 = vmin.f32 %v568_v12, %v82_v28  ;;  %v656_v7 = vmax.f32 %v568_v12, %v82_v28  ;;  %v659_v8 = vmin.f32 %v570_v13, %v80_v29  ;;  %v662_v9 = vmax.f32 %v570_v13, %v80_v29 }
  0xa2   :  { %v596_v30 = vpop.permute.xlu1 %85  ;;  %v598_v31 = vpop.permute.xlu0 %83 }
  0xa3   :  { %v668_v11 = vmax.f32 %v574_v14, %v596_v30  ;;  %v674_v12 = vmax.f32 %v576_v15, %v598_v31 }
  0xa6   :  { %v138_v43 = vpop.permute.xlu1 %137  ;;  %v136_v44 = vpop.permute.xlu0 %135 }
  0xa7   :  { %v184_v47 = vmin.f32 %v120_v38, %v138_v43  ;;  %v183_v48 = vmin.f32 %v119_v35, %v136_v44  ;;  %v200_v59 = vmax.f32 %v120_v38, %v138_v43  ;;  %v199_v60 = vmax.f32 %v119_v35, %v136_v44 }
  0xa9   :  { %v216_v63 = vmin.f32 %v104_v39, %v184_v47  ;;  %v232_v0 = vmax.f32 %v104_v39, %v184_v47  ;;  %v215_v1 = vmin.f32 %v103_v34, %v183_v48  ;;  %v231_v2 = vmax.f32 %v103_v34, %v183_v48 }
  0xaa   :  { %v142_v61 = vpop.permute.xlu1 %141  ;;  %v140_v62 = vpop.permute.xlu0 %139  ;;  %v275_v21 = vmin.f32 %v199_v60, %v200_v59 }
  0xab   :  { %v186_v5 = vmin.f32 %v122_v37, %v142_v61  ;;  %v185_v6 = vmin.f32 %v121_v33, %v140_v62  ;;  %v664_v10 = vmax.f32 %v121_v33, %v140_v62  ;;  %v670_v16 = vmax.f32 %v122_v37, %v142_v61 }
  0xac   :  { %v247_v20 = vmax.f32 %v215_v1, %v216_v63  ;;  %v317_v22 = vmax.f32 %v231_v2, %v232_v0  ;;  %v303_v23 = vmin.f32 %v231_v2, %v232_v0 }
  0xad   :  { %v217_v17 = vmin.f32 %v105_v32, %v185_v6  ;;  %v233_v18 = vmax.f32 %v105_v32, %v185_v6  ;;  %v218_v24 = vmin.f32 %v106_v36, %v186_v5  ;;  %v234_v25 = vmax.f32 %v106_v36, %v186_v5 }
  0xae   :  { %v144_v19 = vpop.permute.xlu0 %143  ;;  %v146_v13 = vpop.permute.xlu1 %145  ;;  %v276_v28 = vmin.f32 %v200_v59, %v664_v10  ;;  %v277_v32 = vmin.f32 %v664_v10, %v670_v16  ;;  %v289_v34 = vmin.f32 %v275_v21, %v664_v10 }
  0xaf   :  { %v187_v26 = vmin.f32 %v123_v45, %v144_v19  ;;  %v248_v27 = vmax.f32 %v216_v63, %v217_v17  ;;  %v318_v29 = vmax.f32 %v232_v0, %v233_v18  ;;  %v331_v33 = vmin.f32 %v317_v22, %v233_v18 }
  0xb0   :  { %v188_v35 = vmin.f32 %v124_v41, %v146_v13  ;;  %v680_v37 = vmax.f32 %v124_v41, %v146_v13  ;;  %v261_v38 = vmax.f32 %v247_v20, %v217_v17  ;;  %v304_v39 = vmin.f32 %v232_v0, %v233_v18 }
  0xb1   :  { %v332_v43 = vmin.f32 %v318_v29, %v234_v25  ;;  %v345_v44 = vmax.f32 %v303_v23, %v331_v33  ;;  %v249_v36 = vmax.f32 %v217_v17, %v218_v24  ;;  %v682_v47 = vmax.f32 %v123_v45, %v144_v19 }
  0xb2   :  { %v685_v48 = vmin.f32 %v613_v42, %v187_v26  ;;  %v688_v59 = vmax.f32 %v613_v42, %v187_v26  ;;  %v148_v60 = vpop.permute.xlu0 %147  ;;  %v262_v61 = vmax.f32 %v248_v27, %v218_v24  ;;  %v290_v62 = vmin.f32 %v276_v28, %v670_v16  ;;  %v150_v1 = vpop.permute.xlu1 %149 }
  0xb3   :  { %v346_v63 = vmax.f32 %v304_v39, %v332_v43  ;;  %v373_v41 = vmax.f32 %v261_v38, %v345_v44  ;;  %v220_v0 = vmin.f32 %v609_v40, %v188_v35  ;;  %v693_v2 = vmax.f32 %v609_v40, %v188_v35 }
  0xb4   :  { %v305_v45 = vmin.f32 %v233_v18, %v234_v25  ;;  %v319_v5 = vmax.f32 %v233_v18, %v234_v25  ;;  %v359_v6 = vmin.f32 %v261_v38, %v345_v44  ;;  %v189_v42 = vmin.f32 %v626_v51, %v148_v60 }
  0xb5   :  { %v374_v10 = vmax.f32 %v262_v61, %v346_v63  ;;  %v387_v17 = vmin.f32 %v373_v41, %v289_v34  ;;  %v250_v19 = vmax.f32 %v218_v24, %v685_v48  ;;  %v278_v20 = vmin.f32 %v670_v16, %v682_v47 }
  0xb6   :  { %v320_v21 = vmax.f32 %v234_v25, %v688_v59  ;;  %v190_v22 = vmin.f32 %v620_v49, %v150_v1  ;;  %v360_v13 = vmin.f32 %v262_v61, %v346_v63  ;;  %v333_v26 = vmin.f32 %v319_v5, %v688_v59 }
  0xb7   :  { %v388_v23 = vmin.f32 %v374_v10, %v290_v62  ;;  %v401_v40 = vmax.f32 %v359_v6, %v387_v17  ;;  %v251_v18 = vmax.f32 %v685_v48, %v220_v0  ;;  %v306_v27 = vmin.f32 %v234_v25, %v688_v59 }
  0xb8   :  { %v334_v28 = vmin.f32 %v320_v21, %v693_v2  ;;  %v706_v24 = vmax.f32 %v620_v49, %v150_v1  ;;  %v263_v16 = vmax.f32 %v249_v36, %v685_v48  ;;  %v347_v33 = vmax.f32 %v305_v45, %v333_v26  ;;  %v154_v48 = vpop.permute.xlu1 %153 }
  0xb9   :  { %v402_v29 = vmax.f32 %v360_v13, %v388_v23  ;;  %416 = vst.msk [vmem:[#allocation5] sm:$0xff] %vm415_vm0, %v401_v40  ;;  %v711_v34 = vmin.f32 %v623_v50, %v189_v42  ;;  %v264_v35 = vmax.f32 %v250_v19, %v220_v0  ;;  %v279_v38 = vmin.f32 %v682_v47, %v680_v37 }
  0xba   :  { %v348_v39 = vmax.f32 %v306_v27, %v334_v28  ;;  %v716_v25 = vmax.f32 %v623_v50, %v189_v42  ;;  %v291_v49 = vmin.f32 %v277_v32, %v682_v47  ;;  %v292_v43 = vmin.f32 %v278_v20, %v680_v37 }
  0xbb   :  { %417 = vst.msk [vmem:[#allocation5 + $0x8] sm:$0xff] %vm415_vm0, %v402_v29  ;;  %v375_v44 = vmax.f32 %v263_v16, %v347_v33  ;;  %v722_v36 = vmax.f32 %v626_v51, %v148_v60  ;;  %v725_v62 = vmin.f32 %v617_v46, %v190_v22  ;;  %v728_v63 = vmax.f32 %v617_v46, %v190_v22  ;;  %v152_v51 = vpop.permute.xlu0 %151 }
  0xbc   :  { %v376_v61 = vmax.f32 %v264_v35, %v348_v39  ;;  %v307_v50 = vmin.f32 %v688_v59, %v693_v2  ;;  %v361_v41 = vmin.f32 %v263_v16, %v347_v33  ;;  %v321_v32 = vmax.f32 %v688_v59, %v693_v2  ;;  %v158_v26 = vpop.permute.xlu1 %157 }
  0xbd   :  { %v389_v1 = vmin.f32 %v375_v44, %v291_v49  ;;  %v252_v47 = vmax.f32 %v220_v0, %v711_v34  ;;  %v362_v60 = vmin.f32 %v264_v35, %v348_v39  ;;  %v322_v5 = vmax.f32 %v693_v2, %v716_v25 }
  0xbe   :  { %v390_v45 = vmin.f32 %v376_v61, %v292_v43  ;;  %v192_v6 = vmin.f32 %v632_v53, %v154_v48  ;;  %v280_v10 = vmin.f32 %v680_v37, %v722_v36  ;;  %v335_v17 = vmin.f32 %v321_v32, %v716_v25 }
  0xbf   :  { %v403_v46 = vmax.f32 %v361_v41, %v389_v1  ;;  %v742_v42 = vmax.f32 %v632_v53, %v154_v48  ;;  %v253_v0 = vmax.f32 %v711_v34, %v725_v62  ;;  %v308_v19 = vmin.f32 %v693_v2, %v716_v25  ;;  %v156_v16 = vpop.permute.xlu0 %155 }
  0xc0   :  { %v404_v59 = vmax.f32 %v362_v60, %v390_v45  ;;  %v336_v20 = vmin.f32 %v322_v5, %v728_v63  ;;  %v265_v21 = vmax.f32 %v251_v18, %v711_v34  ;;  %v266_v37 = vmax.f32 %v252_v47, %v725_v62 }
  0xc1   :  { %418 = vst.msk [vmem:[#allocation5 + $0x10] sm:$0xff] %vm415_vm0, %v403_v46  ;;  %v349_v22 = vmax.f32 %v307_v50, %v335_v17  ;;  %v191_v13 = vmin.f32 %v638_v55, %v152_v51  ;;  %v281_v53 = vmin.f32 %v722_v36, %v706_v24  ;;  %v293_v23 = vmin.f32 %v279_v38, %v722_v36 }
  0xc2   :  { %419 = vst.msk [vmem:[#allocation5 + $0x18] sm:$0xff] %vm415_vm0, %v404_v59  ;;  %v350_v40 = vmax.f32 %v308_v19, %v336_v20  ;;  %v207_v2 = vmax.f32 %v638_v55, %v152_v51  ;;  %v294_v27 = vmin.f32 %v280_v10, %v706_v24  ;;  %v224_v34 = vmin.f32 %v629_v52, %v192_v6 }
  0xc3   :  { %v377_v28 = vmax.f32 %v265_v21, %v349_v22  ;;  %v223_v18 = vmin.f32 %v635_v54, %v191_v13  ;;  %v239_v29 = vmax.f32 %v635_v54, %v191_v13  ;;  %v240_v35 = vmax.f32 %v629_v52, %v192_v6 }
  0xc4   :  { %v378_v33 = vmax.f32 %v266_v37, %v350_v40  ;;  %v309_v38 = vmin.f32 %v716_v25, %v728_v63  ;;  %v363_v39 = vmin.f32 %v265_v21, %v349_v22  ;;  %v323_v55 = vmax.f32 %v716_v25, %v728_v63 }
  0xc5   :  { %v391_v49 = vmin.f32 %v377_v28, %v293_v23  ;;  %v194_v43 = vmin.f32 %v644_v57, %v158_v26  ;;  %v364_v44 = vmin.f32 %v266_v37, %v350_v40  ;;  %v282_v54 = vmin.f32 %v706_v24, %v207_v2  ;;  %v162_v40 = vpop.permute.xlu1 %161 }
  0xc6   :  { %v392_v36 = vmin.f32 %v378_v33, %v294_v27  ;;  %v193_v48 = vmin.f32 %v650_v3, %v156_v16  ;;  %v254_v50 = vmax.f32 %v725_v62, %v223_v18  ;;  %v324_v52 = vmax.f32 %v728_v63, %v239_v29 }
  0xc7   :  { %v405_v61 = vmax.f32 %v363_v39, %v391_v49  ;;  %v337_v41 = vmin.f32 %v323_v55, %v239_v29  ;;  %v283_v32 = vmin.f32 %v207_v2, %v742_v42  ;;  %v774_v47 = vmax.f32 %v644_v57, %v158_v26 }
  0xc8   :  { %v406_v1 = vmax.f32 %v364_v44, %v392_v36  ;;  %v777_v25 = vmax.f32 %v650_v3, %v156_v16  ;;  %v267_v24 = vmax.f32 %v253_v0, %v223_v18  ;;  %v310_v51 = vmin.f32 %v728_v63, %v239_v29 }
  0xc9   :  { %420 = vst.msk [vmem:[#allocation5 + $0x20] sm:$0xff] %vm415_vm0, %v405_v61  ;;  %v338_v60 = vmin.f32 %v324_v52, %v240_v35  ;;  %v351_v45 = vmax.f32 %v309_v38, %v337_v41  ;;  %v255_v62 = vmax.f32 %v223_v18, %v224_v34  ;;  %v295_v5 = vmin.f32 %v281_v53, %v207_v2  ;;  %v160_v2 = vpop.permute.xlu0 %159  ;;  %v166_v41 = vpop.permute.xlu1 %165 }
  0xca   :  { %421 = vst.msk [vmem:[#allocation5 + $0x28] sm:$0xff] %vm415_vm0, %v406_v1  ;;  %v225_v6 = vmin.f32 %v647_v58, %v193_v48  ;;  %v784_v46 = vmax.f32 %v647_v58, %v193_v48  ;;  %v268_v57 = vmax.f32 %v254_v50, %v224_v34  ;;  %v296_v3 = vmin.f32 %v282_v54, %v742_v42 }
  0xcb   :  { %v352_v10 = vmax.f32 %v310_v51, %v338_v60  ;;  %v379_v17 = vmax.f32 %v267_v24, %v351_v45  ;;  %v788_v59 = vmin.f32 %v641_v56, %v194_v43  ;;  %v791_v63 = vmax.f32 %v641_v56, %v194_v43 }
  0xcc   :  { %v311_v0 = vmin.f32 %v239_v29, %v240_v35  ;;  %v325_v19 = vmax.f32 %v239_v29, %v240_v35  ;;  %v365_v20 = vmin.f32 %v267_v24, %v351_v45  ;;  %v284_v58 = vmin.f32 %v742_v42, %v777_v25 }
  0xcd   :  { %v380_v21 = vmax.f32 %v268_v57, %v352_v10  ;;  %v393_v37 = vmin.f32 %v379_v17, %v295_v5  ;;  %v256_v22 = vmax.f32 %v224_v34, %v225_v6  ;;  %v285_v13 = vmin.f32 %v777_v25, %v774_v47 }
  0xce   :  { %v326_v53 = vmax.f32 %v240_v35, %v784_v46  ;;  %v339_v23 = vmin.f32 %v325_v19, %v784_v46  ;;  %v366_v56 = vmin.f32 %v268_v57, %v352_v10  ;;  %v297_v28 = vmin.f32 %v283_v32, %v777_v25 }
  0xcf   :  { %v394_v26 = vmin.f32 %v380_v21, %v296_v3  ;;  %v407_v27 = vmax.f32 %v365_v20, %v393_v37  ;;  %v269_v18 = vmax.f32 %v255_v62, %v225_v6  ;;  %v312_v29 = vmin.f32 %v240_v35, %v784_v46  ;;  %v164_v62 = vpop.permute.xlu0 %163 }
  0xd0   :  { %v340_v42 = vmin.f32 %v326_v53, %v791_v63  ;;  %v353_v16 = vmax.f32 %v311_v0, %v339_v23  ;;  %v196_v34 = vmin.f32 %v656_v7, %v162_v40  ;;  %v195_v38 = vmin.f32 %v662_v9, %v160_v2 }
  0xd1   :  { %v408_v33 = vmax.f32 %v366_v56, %v394_v26  ;;  %422 = vst.msk [vmem:[#allocation5 + $0x30] sm:$0xff] %vm415_vm0, %v407_v27  ;;  %v806_v39 = vmax.f32 %v662_v9, %v160_v2  ;;  %v257_v49 = vmax.f32 %v225_v6, %v788_v59  ;;  %v270_v55 = vmax.f32 %v256_v22, %v788_v59 }
  0xd2   :  { %v354_v43 = vmax.f32 %v312_v29, %v340_v42  ;;  %v381_v44 = vmax.f32 %v269_v18, %v353_v16  ;;  %v298_v35 = vmin.f32 %v284_v58, %v774_v47  ;;  %v313_v36 = vmin.f32 %v784_v46, %v791_v63 }
  0xd3   :  { %423 = vst.msk [vmem:[#allocation5 + $0x38] sm:$0xff] %vm415_vm0, %v408_v33  ;;  %v227_v54 = vmin.f32 %v659_v8, %v195_v38  ;;  %v243_v48 = vmax.f32 %v659_v8, %v195_v38  ;;  %v367_v61 = vmin.f32 %v269_v18, %v353_v16  ;;  %v327_v52 = vmax.f32 %v784_v46, %v791_v63 }
  0xd4   :  { %v382_v9 = vmax.f32 %v270_v55, %v354_v43  ;;  %v395_v50 = vmin.f32 %v381_v44, %v297_v28  ;;  %v368_v1 = vmin.f32 %v270_v55, %v354_v43  ;;  %v244_v32 = vmax.f32 %v653_v4, %v196_v34 }
  0xd5   :  { %v258_v25 = vmax.f32 %v788_v59, %v227_v54  ;;  %v286_v24 = vmin.f32 %v774_v47, %v806_v39  ;;  %v328_v45 = vmax.f32 %v791_v63, %v243_v48  ;;  %v341_v8 = vmin.f32 %v327_v52, %v243_v48 }
  0xd6   :  { %v396_v51 = vmin.f32 %v382_v9, %v298_v35  ;;  %v409_v60 = vmax.f32 %v367_v61, %v395_v50  ;;  %v212_v5 = vmax.f32 %v656_v7, %v162_v40  ;;  %v228_v6 = vmin.f32 %v653_v4, %v196_v34 }
  0xd7   :  { %v271_v46 = vmax.f32 %v257_v49, %v227_v54  ;;  %v198_v57 = vmin.f32 %v668_v11, %v166_v41  ;;  %v314_v10 = vmin.f32 %v791_v63, %v243_v48  ;;  %v342_v17 = vmin.f32 %v328_v45, %v244_v32 }
  0xd8   :  { %v410_v3 = vmax.f32 %v368_v1, %v396_v51  ;;  %424 = vst.msk [vmem:[#allocation5 + $0x40] sm:$0xff] %vm415_vm0, %v409_v60  ;;  %v355_v47 = vmax.f32 %v313_v36, %v341_v8  ;;  %v118_v59 = vmin.f32 %v574_v14, %v596_v30  ;;  %v117_v0 = vmin.f32 %v576_v15, %v598_v31 }
  0xd9   :  { %v299_v7 = vmin.f32 %v285_v13, %v806_v39  ;;  %v197_v4 = vmin.f32 %v674_v12, %v164_v62  ;;  %v272_v19 = vmax.f32 %v258_v25, %v228_v6  ;;  %v300_v20 = vmin.f32 %v286_v24, %v212_v5 }
  0xda   :  { %425 = vst.msk [vmem:[#allocation5 + $0x48] sm:$0xff] %vm415_vm0, %v410_v3  ;;  %v356_v21 = vmax.f32 %v314_v10, %v342_v17  ;;  %v383_v37 = vmax.f32 %v271_v46, %v355_v47  ;;  %v246_v58 = vmax.f32 %v118_v59, %v198_v57  ;;  %v213_v63 = vmax.f32 %v674_v12, %v164_v62 }
  0xdb   :  { %v229_v22 = vmin.f32 %v117_v0, %v197_v4  ;;  %v245_v53 = vmax.f32 %v117_v0, %v197_v4  ;;  %v369_v23 = vmin.f32 %v271_v46, %v355_v47  ;;  %v329_v40 = vmax.f32 %v243_v48, %v244_v32 }
  0xdc   :  { %v384_v14 = vmax.f32 %v272_v19, %v356_v21  ;;  %v397_v30 = vmin.f32 %v383_v37, %v299_v7  ;;  %v370_v15 = vmin.f32 %v272_v19, %v356_v21  ;;  %v259_v31 = vmax.f32 %v227_v54, %v228_v6 }
  0xdd   :  { %v315_v13 = vmin.f32 %v243_v48, %v244_v32  ;;  %v260_v2 = vmax.f32 %v228_v6, %v229_v22  ;;  %v330_v27 = vmax.f32 %v244_v32, %v245_v53  ;;  %v343_v28 = vmin.f32 %v329_v40, %v245_v53 }
  0xde   :  { %v398_v56 = vmin.f32 %v384_v14, %v300_v20  ;;  %v411_v26 = vmax.f32 %v369_v23, %v397_v30  ;;  %v230_v18 = vmin.f32 %v118_v59, %v198_v57  ;;  %v287_v29 = vmin.f32 %v806_v39, %v212_v5 }
  0xdf   :  { %v273_v42 = vmax.f32 %v259_v31, %v229_v22  ;;  %v288_v16 = vmin.f32 %v212_v5, %v213_v63  ;;  %v316_v33 = vmin.f32 %v244_v32, %v245_v53  ;;  %v344_v34 = vmin.f32 %v330_v27, %v246_v58 }
  0xe0   :  { %v412_v12 = vmax.f32 %v370_v15, %v398_v56  ;;  %426 = vst.msk [vmem:[#allocation5 + $0x50] sm:$0xff] %vm415_vm0, %v411_v26  ;;  %v357_v38 = vmax.f32 %v315_v13, %v343_v28  ;;  %v214_v49 = vmax.f32 %v668_v11, %v166_v41  ;;  %v274_v55 = vmax.f32 %v260_v2, %v230_v18 }
  0xe1   :  { %v301_v43 = vmin.f32 %v287_v29, %v213_v63  ;;  %v358_v44 = vmax.f32 %v316_v33, %v344_v34 }
  0xe2   :  { %427 = vst.msk [vmem:[#allocation5 + $0x58] sm:$0xff] %vm415_vm0, %v412_v12  ;;  %v385_v35 = vmax.f32 %v273_v42, %v357_v38  ;;  %v302_v36 = vmin.f32 %v288_v16, %v214_v49  ;;  %v371_v54 = vmin.f32 %v273_v42, %v357_v38 }
  0xe3   :  { %v386_v48 = vmax.f32 %v274_v55, %v358_v44  ;;  %v372_v61 = vmin.f32 %v274_v55, %v358_v44 }
  0xe4   :  { %v399_v39 = vmin.f32 %v385_v35, %v301_v43 }
  0xe5   :  { %v400_v9 = vmin.f32 %v386_v48, %v302_v36 }
  0xe6   :  { %v413_v50 = vmax.f32 %v371_v54, %v399_v39 }
  0xe7   :  { %v414_v52 = vmax.f32 %v372_v61, %v400_v9 }
  0xe8   :  { %428 = vst.msk [vmem:[#allocation5 + $0x60] sm:$0xff] %vm415_vm0, %v413_v50 }
  0xe9   :  { %429 = vst.msk [vmem:[#allocation5 + $0x68] sm:$0xff] %vm415_vm0, %v414_v52 }
  0xea   :  { %486 = shalt.err (!%p483_p12)
}
  0xeb   :  { %s487_s26 = scalar_lea.hbm %s858_s1, 1792 }
  0xec   :  { %p488_p13 = scmp.ne.s32.totalorder %s858_s1, %s487_s26  ;;  %p491_p0 = scmp.lt.u32.totalorder %s487_s26, %s858_s1 }
  0xee   :  { %p493_p1 = pnand %p491_p0, %p488_p13 }
  0xf0   :  { %496 = shalt.err (!%p493_p1)
}
  0xf1   :  { %441 = dma.vmem_to_hbm [thread:$0]  %s436_s22, 1792, %s858_s1, [#allocation4], %s502_s16, %s502_s16, %s503_s17  }
  0xf2   :  { %499 = dma.done.wait [#allocation4], 1792  }
  0xf3   :  { %500 = vsyncadd [#allocation4], 4294965504 }
  0xf4   :  { %445 = vsyncpa [#allocation3], 1 }
  0xf5   :  { %446 = vsyncpa [#allocation4], 1 }

</bundles_post_ra>
